<compile_context>
chip_gen: v7x
topology: tpu7x:2x2x1
jax: 0.10.0
libtpu: 0.0.40
codegen_flags: <defaults>
</compile_context>

<pallas_src>
import functools

import jax
import jax.numpy as jnp
from jax import lax
from jax.experimental import pallas as pl
from jax.experimental.pallas import tpu as pltpu

# ----------------- small shapes consistent with the module's forward -----------------
N = 2            # batch
C_IN = 4         # image channels
H = W = 16       # spatial
C_ENC = 8        # stand-in encoder hidden channels
IN_DIM = 32      # encoder feature dim (resnet34 fc_feat_in, scaled down)
INTER_DIM = 16   # intermediate_dim
OUT_DIM = 16     # out_dim
K = 64           # queue size (K % batch == 0, as asserted in _dequeue_and_enqueue)
M_MOM = 0.999    # moco momentum
T = 0.07         # softmax temperature

LANES = 128      # TPU vreg lane width
CB = 8           # per-branch conv-input rows: C_IN channels + 1 ones row, padded to 8


# ------------------------------- packing helpers (wrapper) ----------------------------
def _round8(r):
    return (r + 7) // 8 * 8


def _bdiag(a, b):
    """Block-diagonal [[a, 0], [0, b]] (f32)."""
    a = a.astype(jnp.float32)
    b = b.astype(jnp.float32)
    top = jnp.concatenate([a, jnp.zeros((a.shape[0], b.shape[1]), jnp.float32)], axis=1)
    bot = jnp.concatenate([jnp.zeros((b.shape[0], a.shape[1]), jnp.float32), b], axis=1)
    return jnp.concatenate([top, bot], axis=0)


def _bias_rows(bq, bk, n, same_cols=False):
    """[2n, ...] bias block: rows 0..n-1 = q-branch bias, rows n..2n-1 = k-branch bias."""
    bq = jnp.asarray(bq, jnp.float32).reshape(1, -1)
    bk = jnp.asarray(bk, jnp.float32).reshape(1, -1)
    top = jnp.tile(bq, (n, 1))
    bot = jnp.tile(bk, (n, 1))
    if same_cols:                       # last layer: both branches in the left columns
        return jnp.concatenate([top, bot], axis=0)          # [2n, d]
    return _bdiag(top, bot)                                  # [2n, 2d]


def _conv_block(wc, bc):
    """1x1-conv weight as [C_ENC, CB] = [wc^T | bc | zero-pad] (bias fused via ones row)."""
    blk = jnp.concatenate([wc.T, bc.reshape(-1, 1)], axis=1).astype(jnp.float32)
    return jnp.pad(blk, ((0, 0), (0, CB - blk.shape[1])))


def _img_block(img):
    """NCHW image -> lane-major [CB, N*H*W] with a ones row that feeds the conv bias."""
    n, c, h, w = img.shape
    xt = jnp.transpose(img, (1, 0, 2, 3)).reshape(c, n * h * w).astype(jnp.float32)
    ones = jnp.ones((1, n * h * w), jnp.float32)
    return jnp.pad(jnp.concatenate([xt, ones], axis=0), ((0, CB - (c + 1)), (0, 0)))


def _pack_param_slab(mats):
    """Stack matrices row-wise into one lane-dense [R, 128] f32 slab (rows 8-aligned)."""
    blocks, offsets, row = [], [], 0
    for m in mats:
        r, c = m.shape
        blocks.append(jnp.pad(m.astype(jnp.float32),
                              ((0, _round8(r) - r), (0, LANES - c))))
        offsets.append(row)
        row += _round8(r)
    return jnp.concatenate(blocks, axis=0), tuple(offsets)


# ----------------------------------- fused kernel ------------------------------------
def moco_kernel(x_ref, p_ref, out_ref, *, n, hw, inv_t, offs):
    """Whole MoCo forward (both branches + logits) in one invocation, f32 throughout."""
    owc, owp, ow1, ow2, oqu, obp, ob1, ob2 = offs
    f32 = jnp.float32

    def mm(a, b):
        return jnp.dot(a, b, preferred_element_type=f32)

    # --- fused 1x1 conv + bias + ReLU for BOTH branches (lane-major, block weights) ---
    wc = p_ref[owc:owc + 2 * C_ENC, 0:2 * CB]                   # [16, 16]
    x = x_ref[0:2 * CB, :]                                      # [16, 2n*hw]
    h = jnp.maximum(mm(wc, x), 0.0)                             # [2*C_ENC, 2n*hw]

    # --- global average pool for all 2n samples in ONE MXU matmul (contract lanes) ---
    pool = x_ref[2 * CB:2 * CB + 2 * n, :]                      # [2n, 2n*hw]
    pooled = lax.dot_general(pool, h, (((1,), (1,)), ((), ())),
                             preferred_element_type=f32)        # [2n, 2*C_ENC]

    # --- encoder projection + q_fc / k_fc (block-diagonal weights, per-row biases) ---
    wp = p_ref[owp:owp + 2 * C_ENC, 0:2 * IN_DIM]               # [16, 64]
    bp = p_ref[obp:obp + 2 * n, 0:2 * IN_DIM]                   # [2n, 64]
    feats = mm(pooled, wp) + bp                                 # [2n, 64]

    w1 = p_ref[ow1:ow1 + 2 * IN_DIM, 0:2 * INTER_DIM]           # [64, 32]
    b1 = p_ref[ob1:ob1 + 2 * n, 0:2 * INTER_DIM]                # [2n, 32]
    hid = jnp.maximum(mm(feats, w1) + b1, 0.0)                  # [2n, 32]

    w2 = p_ref[ow2:ow2 + 2 * INTER_DIM, 0:OUT_DIM]              # [32, 16]
    b2 = p_ref[ob2:ob2 + 2 * n, 0:OUT_DIM]                      # [2n, 16]
    qk = mm(hid, w2) + b2                                       # [2n, 16] rows: q0..,k0..

    q = qk[0:n, :]                                              # [n, OUT_DIM]
    k = qk[n:2 * n, :]                                          # [n, OUT_DIM]

    # --- logits = cat([l_pos, l_neg], dim=1) / T ---
    queue = p_ref[oqu:oqu + OUT_DIM, 0:K]                       # [16, 64]
    l_pos = jnp.sum(q * k, axis=1, keepdims=True)               # [n, 1]
    l_neg = mm(q, queue)                                        # [n, K]
    logits = jnp.concatenate([l_pos, l_neg], axis=1) * inv_t    # [n, 1+K]

    # --- ONE lane-dense [2n, 128] output slab (unmasked lane store) ---
    top = jnp.concatenate([logits, jnp.zeros((n, LANES - 1 - K), f32)], axis=1)
    bot = jnp.concatenate([k, jnp.zeros((n, LANES - OUT_DIM), f32)], axis=1)
    out_ref[...] = jnp.concatenate([top, bot], axis=0)


def moco_fused_call(x_slab, p_slab, *, n, hw, t, offs):
    kern = functools.partial(moco_kernel, n=n, hw=hw, inv_t=1.0 / t, offs=offs)
    return pl.pallas_call(
        kern,
        out_shape=jax.ShapeDtypeStruct((2 * n, LANES), jnp.float32),
        in_specs=[pl.BlockSpec(memory_space=pltpu.MemorySpace.VMEM),
                  pl.BlockSpec(memory_space=pltpu.MemorySpace.VMEM)],
        out_specs=pl.BlockSpec(memory_space=pltpu.MemorySpace.VMEM),
    )(x_slab, p_slab)


# ------------------------------- module-level wrappers --------------------------------
def momentum_update(q_params, k_params, m=M_MOM):
    # param_k = m * param_k + (1 - m) * param_q — tiny elementwise axpy, fused by XLA.
    return tuple(m * kp + (1.0 - m) * qp for qp, kp in zip(q_params, k_params))


def moco_forward(params, img_q, img_k):
    # momentum update of key encoder + key head (done before computing k, as in torch)
    enc_k = tuple(lax.stop_gradient(p)
                  for p in momentum_update(params["enc_q"], params["enc_k"]))
    kfc = tuple(lax.stop_gradient(p)
                for p in momentum_update(params["qfc"], params["kfc"]))

    wc_q, bc_q, wp_q, bp_q = params["enc_q"]
    w1_q, b1_q, w2_q, b2_q = params["qfc"]
    wc_k, bc_k, wp_k, bp_k = enc_k
    w1_k, b1_k, w2_k, b2_k = kfc

    n, _, h, w = img_q.shape
    hw = h * w
    queue = params["queue"]
    k_len = queue.shape[1]

    # --- pack both branches' weights/biases + queue into ONE lane-dense [R,128] slab ---
    p_slab, offs = _pack_param_slab([
        _bdiag(_conv_block(wc_q, bc_q), _conv_block(wc_k, bc_k)),   # conv  [16, 16]
        _bdiag(wp_q, wp_k),                                         # proj  [16, 64]
        _bdiag(w1_q, w1_k),                                         # fc1   [64, 32]
        jnp.concatenate([w2_q, w2_k], axis=0),                      # fc2   [32, 16]
        queue,                                                      # queue [16, 64]
        _bias_rows(bp_q, bp_k, n),                                  # bp    [2n, 64]
        _bias_rows(b1_q, b1_k, n),                                  # b1    [2n, 32]
        _bias_rows(b2_q, b2_k, n, same_cols=True),                  # b2    [2n, 16]
    ])

    # --- pack both images + the average-pool operand into ONE lane-major slab ---
    cols = 2 * n * hw
    pool = (jnp.arange(cols)[None, :] // hw ==
            jnp.arange(2 * n)[:, None]).astype(jnp.float32) / hw    # [2n, 2n*hw]
    x_slab = jnp.concatenate(
        [_bdiag(_img_block(img_q), _img_block(img_k)), pool], axis=0)   # [2*CB+2n, 2n*hw]

    out = moco_fused_call(x_slab, p_slab, n=n, hw=hw, t=T, offs=offs)
    logits = out[:n, :1 + k_len]
    k_keys = lax.stop_gradient(out[n:2 * n, :OUT_DIM])   # key branch is under no_grad

    labels = jnp.zeros((n,), jnp.int32)                  # torch.long -> int32

    # queue[:, ptr:ptr+batch] = k.T ; ptr = (ptr + batch) % K  (donated -> in place)
    ptr = params["queue_ptr"][0]
    new_queue = lax.dynamic_update_slice(queue, k_keys.T, (jnp.int32(0), ptr))
    new_ptr = params["queue_ptr"].at[0].set((ptr + n) % k_len)

    new_params = dict(params, enc_k=enc_k, kfc=kfc, queue=new_queue, queue_ptr=new_ptr)
    return logits, labels, new_params


# ------------------------------ pure-JAX reference (check) ----------------------------
def _reference_forward(params, img_q, img_k):
    enc_k = momentum_update(params["enc_q"], params["enc_k"])
    kfc = momentum_update(params["qfc"], params["kfc"])

    def branch(img, enc, fc):
        wc, bc, wp, bp = enc
        w1, b1, w2, b2 = fc
        n, c, h, w = img.shape
        x = jnp.transpose(img, (0, 2, 3, 1)).reshape(n, h * w, c)
        hact = jnp.maximum(jnp.einsum("npc,ce->npe", x, wc) + bc, 0.0)
        pooled = hact.mean(axis=1)
        feats = pooled @ wp + bp
        hid = jnp.maximum(feats @ w1 + b1, 0.0)
        return hid @ w2 + b2

    q = branch(img_q, params["enc_q"], params["qfc"])
    k = branch(img_k, enc_k, kfc)
    l_pos = jnp.sum(q * k, axis=1, keepdims=True)
    l_neg = q @ params["queue"]
    return jnp.concatenate([l_pos, l_neg], axis=1) / T, k


# --------------------------------- parameter init -------------------------------------
def init_params(key):
    ks = jax.random.split(key, 6)

    def lin(k, fan_in, fan_out):
        wgt = jax.random.normal(k, (fan_in, fan_out), jnp.float32) / jnp.sqrt(
            jnp.float32(fan_in))
        return wgt, jnp.zeros((fan_out,), jnp.float32)

    wc, bc = lin(ks[0], C_IN, C_ENC)
    wp, bp = lin(ks[1], C_ENC, IN_DIM)
    enc_q = (wc, bc, wp, bp)

    w1, b1 = lin(ks[2], IN_DIM, INTER_DIM)
    w2, b2 = lin(ks[3], INTER_DIM, OUT_DIM)
    qfc = (w1, b1, w2, b2)

    # key encoder / key head start as copies of the query ones (MoCo __init__)
    enc_k = tuple(jnp.array(p) for p in enc_q)
    kfc = tuple(jnp.array(p) for p in qfc)

    # queue buffer: randn(out_dim, K) normalized along dim=0
    queue = jax.random.normal(ks[4], (OUT_DIM, K), jnp.float32)
    queue = queue / jnp.linalg.norm(queue, axis=0, keepdims=True)
    queue_ptr = jnp.zeros((1,), jnp.int32)

    return dict(enc_q=enc_q, enc_k=enc_k, qfc=qfc, kfc=kfc,
                queue=queue, queue_ptr=queue_ptr)


# -------------------------------------- main --------------------------------------------
if __name__ == "__main__":
    key = jax.random.PRNGKey(0)
    kp, kq, kk = jax.random.split(key, 3)

    params = init_params(kp)
    img_q = jax.random.normal(kq, (N, C_IN, H, W), jnp.float32)
    img_k = jax.random.normal(kk, (N, C_IN, H, W), jnp.float32)

    # reference computed first (params are donated to the jitted forward below)
    ref_logits, ref_k = _reference_forward(params, img_q, img_k)
    jax.block_until_ready((ref_logits, ref_k))

    fwd = jax.jit(moco_forward, donate_argnums=(0,))   # queue / key params updated in place
    logits, labels, new_params = fwd(params, img_q, img_k)
    jax.block_until_ready((logits, labels, new_params["queue"]))

    assert logits.shape == (N, 1 + K), logits.shape
    assert labels.shape == (N,), labels.shape
    assert new_params["queue"].shape == (OUT_DIM, K)
    assert int(new_params["queue_ptr"][0]) == N % K
    # loose tolerance: XLA reference dots may take bf16 MXU passes; kernel math is f32
    assert jnp.allclose(logits, ref_logits, rtol=5e-2, atol=5e-1), "logits mismatch"
    assert jnp.allclose(new_params["queue"][:, :N], ref_k.T, rtol=5e-2, atol=5e-2), \
        "enqueued keys mismatch"

    print("KERNEL_OK")
</pallas_src>

<mosaic_0001>
module attributes {stable_mosaic.version = 11 : i64} {
  func.func @moco_kernel(%arg0: memref<20x1024xf32, #tpu.memory_space<vmem>>, %arg1: memref<168x128xf32, #tpu.memory_space<vmem>>, %arg2: memref<4x128xf32, #tpu.memory_space<vmem>>) attributes {dimension_semantics = [], scalar_prefetch = 0 : i64, scratch_operands = 0 : i64, tpu.core_type = #tpu.core_type<tc>} {
    %c0 = arith.constant 0 : index
    %c0_0 = arith.constant 0 : index
    %0 = vector.load %arg1[%c0, %c0_0] : memref<168x128xf32, #tpu.memory_space<vmem>>, vector<16x16xf32>
    %c0_1 = arith.constant 0 : index
    %c0_2 = arith.constant 0 : index
    %1 = vector.load %arg0[%c0_1, %c0_2] : memref<20x1024xf32, #tpu.memory_space<vmem>>, vector<16x1024xf32>
    %cst = arith.constant dense<0.000000e+00> : vector<16x1024xf32>
    %2 = tpu.matmul %0, %1, %cst {dimension_numbers = #tpu.dot_dimension_numbers<[1], [0], [0], [1], [0, 0, 1, 1], [], []>} : vector<16x16xf32>, vector<16x1024xf32>, vector<16x1024xf32> -> vector<16x1024xf32>
    %cst_3 = arith.constant 0.000000e+00 : f32
    %3 = vector.broadcast %cst_3 : f32 to vector<16x1024xf32>
    %4 = arith.maximumf %2, %3 : vector<16x1024xf32>
    %c16 = arith.constant 16 : index
    %c0_4 = arith.constant 0 : index
    %5 = vector.load %arg0[%c16, %c0_4] : memref<20x1024xf32, #tpu.memory_space<vmem>>, vector<4x1024xf32>
    %cst_5 = arith.constant dense<0.000000e+00> : vector<4x16xf32>
    %6 = tpu.matmul %5, %4, %cst_5 {dimension_numbers = #tpu.dot_dimension_numbers<[1], [1], [0], [0], [0, 0, 1, 0], [], []>} : vector<4x1024xf32>, vector<16x1024xf32>, vector<4x16xf32> -> vector<4x16xf32>
    %c16_6 = arith.constant 16 : index
    %c0_7 = arith.constant 0 : index
    %7 = vector.load %arg1[%c16_6, %c0_7] : memref<168x128xf32, #tpu.memory_space<vmem>>, vector<16x64xf32>
    %c144 = arith.constant 144 : index
    %c0_8 = arith.constant 0 : index
    %8 = vector.load %arg1[%c144, %c0_8] : memref<168x128xf32, #tpu.memory_space<vmem>>, vector<4x64xf32>
    %cst_9 = arith.constant dense<0.000000e+00> : vector<4x64xf32>
    %9 = tpu.matmul %6, %7, %cst_9 {dimension_numbers = #tpu.dot_dimension_numbers<[1], [0], [0], [1], [0, 0, 1, 1], [], []>} : vector<4x16xf32>, vector<16x64xf32>, vector<4x64xf32> -> vector<4x64xf32>
    %10 = arith.addf %9, %8 : vector<4x64xf32>
    %c32 = arith.constant 32 : index
    %c0_10 = arith.constant 0 : index
    %11 = vector.load %arg1[%c32, %c0_10] : memref<168x128xf32, #tpu.memory_space<vmem>>, vector<64x32xf32>
    %c152 = arith.constant 152 : index
    %c0_11 = arith.constant 0 : index
    %12 = vector.load %arg1[%c152, %c0_11] : memref<168x128xf32, #tpu.memory_space<vmem>>, vector<4x32xf32>
    %cst_12 = arith.constant dense<0.000000e+00> : vector<4x32xf32>
    %13 = tpu.matmul %10, %11, %cst_12 {dimension_numbers = #tpu.dot_dimension_numbers<[1], [0], [0], [1], [0, 0, 1, 1], [], []>} : vector<4x64xf32>, vector<64x32xf32>, vector<4x32xf32> -> vector<4x32xf32>
    %14 = arith.addf %13, %12 : vector<4x32xf32>
    %cst_13 = arith.constant 0.000000e+00 : f32
    %15 = vector.broadcast %cst_13 : f32 to vector<4x32xf32>
    %16 = arith.maximumf %14, %15 : vector<4x32xf32>
    %c96 = arith.constant 96 : index
    %c0_14 = arith.constant 0 : index
    %17 = vector.load %arg1[%c96, %c0_14] : memref<168x128xf32, #tpu.memory_space<vmem>>, vector<32x16xf32>
    %c160 = arith.constant 160 : index
    %c0_15 = arith.constant 0 : index
    %18 = vector.load %arg1[%c160, %c0_15] : memref<168x128xf32, #tpu.memory_space<vmem>>, vector<4x16xf32>
    %cst_16 = arith.constant dense<0.000000e+00> : vector<4x16xf32>
    %19 = tpu.matmul %16, %17, %cst_16 {dimension_numbers = #tpu.dot_dimension_numbers<[1], [0], [0], [1], [0, 0, 1, 1], [], []>} : vector<4x32xf32>, vector<32x16xf32>, vector<4x16xf32> -> vector<4x16xf32>
    %20 = arith.addf %19, %18 : vector<4x16xf32>
    %21 = vector.extract_strided_slice %20 {offsets = [0, 0], sizes = [2, 16], strides = [1, 1]} : vector<4x16xf32> to vector<2x16xf32>
    %22 = vector.extract_strided_slice %20 {offsets = [2, 0], sizes = [2, 16], strides = [1, 1]} : vector<4x16xf32> to vector<2x16xf32>
    %c128 = arith.constant 128 : index
    %c0_17 = arith.constant 0 : index
    %23 = vector.load %arg1[%c128, %c0_17] : memref<168x128xf32, #tpu.memory_space<vmem>>, vector<16x64xf32>
    %24 = arith.mulf %21, %22 : vector<2x16xf32>
    %cst_18 = arith.constant dense<0.000000e+00> : vector<2xf32>
    %25 = vector.multi_reduction <add>, %24, %cst_18 [1] : vector<2x16xf32> to vector<2xf32>
    %26 = vector.shape_cast %25 : vector<2xf32> to vector<2x1xf32>
    %cst_19 = arith.constant dense<0.000000e+00> : vector<2x64xf32>
    %27 = tpu.matmul %21, %23, %cst_19 {dimension_numbers = #tpu.dot_dimension_numbers<[1], [0], [0], [1], [0, 0, 1, 1], [], []>} : vector<2x16xf32>, vector<16x64xf32>, vector<2x64xf32> -> vector<2x64xf32>
    %28 = tpu.concatenate %26, %27 in 1 : vector<2x1xf32>, vector<2x64xf32> -> vector<2x65xf32>
    %cst_20 = arith.constant 14.2857141 : f32
    %29 = vector.broadcast %cst_20 : f32 to vector<2x65xf32>
    %30 = arith.mulf %28, %29 : vector<2x65xf32>
    %cst_21 = arith.constant 0.000000e+00 : f32
    %31 = vector.broadcast %cst_21 : f32 to vector<2x63xf32>
    %32 = tpu.concatenate %30, %31 in 1 : vector<2x65xf32>, vector<2x63xf32> -> vector<2x128xf32>
    %cst_22 = arith.constant 0.000000e+00 : f32
    %33 = vector.broadcast %cst_22 : f32 to vector<2x112xf32>
    %34 = tpu.concatenate %22, %33 in 1 : vector<2x16xf32>, vector<2x112xf32> -> vector<2x128xf32>
    %35 = tpu.concatenate %32, %34 in 0 : vector<2x128xf32>, vector<2x128xf32> -> vector<4x128xf32>
    %c0_23 = arith.constant 0 : index
    %c0_24 = arith.constant 0 : index
    %36 = vector.load %arg2[%c0_23, %c0_24] : memref<4x128xf32, #tpu.memory_space<vmem>>, vector<4x128xf32>
    tpu.vector_store %arg2[%c0_23, %c0_24], %35 {strides = array<i32>} : memref<4x128xf32, #tpu.memory_space<vmem>>, vector<4x128xf32>,
    return
  }
}

</mosaic_0001>

<bundles_post_ra>
// kernel: moco_forward.1
= control target key start
LH: loop header
LB: loop body
LE: loop exit
PB: predicated region body
PF: predicated region fallthrough
CT: control target
= control target key end

     0   :  { %v1128_v3 = vmov 0.0   ;;  %vm29_vm0 = vcmask 130048   ;;  %v1129_v30 = vmov 0.0|0.0   ;;  %vm1130_vm1 = vmmov 0   ;;  %s1131_s14 = smov 1   ;;  %s1320_s0 = inlined_call_operand.vmem [shape: f32[20,1024], index: 0, kind: input, shape index: {}]   ;;  %s1321_s1 = inlined_call_operand.vmem [shape: f32[168,128], index: 1, kind: input, shape index: {}]   ;;  %s1322_s2 = inlined_call_operand.vmem [shape: f32[4,128], index: 2, kind: output, shape index: {}]  }
   0x1   :  { %v14_v0 = vld [vmem:[%s1320_s0 + $0x8] sm:$0xff]  ;;  %v13_v2 = vld [vmem:[%s1320_s0] sm:$0xff]  ;;  %100 = vmatprep.mubr.f32.mxu0 %v1128_v3  ;;  %177 = vmatprep.mubr.f32.mxu1 %v1128_v3  ;;  %v16_v6 = vld [vmem:[%s1320_s0 + $0x18] sm:$0xff]  ;;  %vm733_vm2 = vcmask 523264   ;;  %vm813_vm3 = vcmask 261120   ;;  %vm893_vm4 = vcmask 123904  }
   0x2   :  { %v22_v1 = vld [vmem:[%s1320_s0 + $0x48] sm:$0xff]  ;;  %v21_v5 = vld [vmem:[%s1320_s0 + $0x40] sm:$0xff]  ;;  %v24_v7 = vld [vmem:[%s1320_s0 + $0x58] sm:$0xff]  ;;  %vm973_vm5 = vcmask 7168   ;;  %vm976_vm6 = vcmask 531456   ;;  %vm979_vm7 = vcmask 1041408  }
   0x3   :  { %v1062_v4 = vpack.c.bf16 %v22_v1, %v14_v0  ;;  %v1064_v8 = vpack.c.bf16 %v21_v5, %v13_v2  ;;  %v1066_v9 = vpack.c.bf16 %v24_v7, %v16_v6  ;;  %v15_v10 = vld [vmem:[%s1320_s0 + $0x10] sm:$0xff]  ;;  %v11_v12 = vld [vmem:[%s1321_s1] sm:$0xff]  ;;  %v18_v14 = vld [vmem:[%s1320_s0 + $0x28] sm:$0xff] }
   0x4   :  { %v23_v11 = vld [vmem:[%s1320_s0 + $0x50] sm:$0xff]  ;;  %v26_v15 = vld [vmem:[%s1320_s0 + $0x68] sm:$0xff]  ;;  %v17_v17 = vld [vmem:[%s1320_s0 + $0x20] sm:$0xff] }
   0x5   :  { %1063 = vmatprep.subr.bf16.mxu0 %v1062_v4  ;;  %v1068_v13 = vpack.c.bf16 %v23_v11, %v15_v10  ;;  %1067 = vmatprep.subr.bf16.mxu1 %v1066_v9  ;;  %v1070_v16 = vpack.c.bf16 %v26_v15, %v18_v14  ;;  %v25_v18 = vld [vmem:[%s1320_s0 + $0x60] sm:$0xff]  ;;  %v20_v19 = vld [vmem:[%s1320_s0 + $0x38] sm:$0xff]  ;;  %v19_v22 = vld [vmem:[%s1320_s0 + $0x30] sm:$0xff] }
   0x6   :  { %1065 = vmatpush1.bf16.msra.mxu0 %v1064_v8  ;;  %v1072_v20 = vpack.c.bf16 %v25_v18, %v17_v17  ;;  %v28_v21 = vld [vmem:[%s1320_s0 + $0x78] sm:$0xff]  ;;  %v27_v23 = vld [vmem:[%s1320_s0 + $0x70] sm:$0xff]  ;;  %v12_v26 = vld [vmem:[%s1321_s1 + $0x8] sm:$0xff] }
   0x7   :  { %1069 = vmatpush1.bf16.msra.mxu1 %v1068_v13  ;;  %1071 = vmatprep.subr.bf16.mxu0 %v1070_v16  ;;  %v1074_v24 = vpack.c.bf16 %v28_v21, %v20_v19  ;;  %v1076_v25 = vpack.c.bf16 %v27_v23, %v19_v22  ;;  %v361_v27 = vld [vmem:[%s1320_s0 + $0x88] sm:$0xf]  ;;  %v648_v28 = vld [vmem:[%s1321_s1 + $0x10] sm:$0xff]  ;;  %v649_v29 = vld [vmem:[%s1321_s1 + $0x18] sm:$0xff] }
   0x8   :  { %v1095_v31 = vpack.c.bf16 %v649_v29, %v648_v28  ;;  %v360_v5 = vld [vmem:[%s1320_s0 + $0x80] sm:$0xf]  ;;  %v363_v9 = vld [vmem:[%s1320_s0 + $0x98] sm:$0xf]  ;;  %v362_v11 = vld [vmem:[%s1320_s0 + $0x90] sm:$0xf] }
   0x9   :  { %986 = vmatmul.mubr.msk.f32.vlgmr.msra.gmra.mrb[0].mxu0 %vm29_vm0, %v11_v12  ;;  %1075 = vmatprep.subr.bf16.mxu1 %v1074_v24  ;;  %v364_v13 = vld [vmem:[%s1320_s0 + $0xa0] sm:$0xf]  ;;  %v367_v14 = vld [vmem:[%s1320_s0 + $0xb8] sm:$0xf]  ;;  %v366_v15 = vld [vmem:[%s1320_s0 + $0xb0] sm:$0xf] }
   0xa   :  { %106 = vmatprep.mubr.f32.mxu0 %v1128_v3  ;;  %988 = vmatmul.mubr.msk.f32.vlgmr.msra.gmra.mrb[0].mxu1 %vm29_vm0, %v11_v12  ;;  %v724_v16 = vld [vmem:[%s1321_s1 + $0x20] sm:$0xff]  ;;  %v725_v17 = vld [vmem:[%s1321_s1 + $0x28] sm:$0xff]  ;;  %v726_v19 = vld [vmem:[%s1321_s1 + $0x30] sm:$0xff] }
   0xb   :  { %183 = vmatprep.mubr.f32.mxu1 %v1128_v3  ;;  %1073 = vmatpush1.bf16.msra.mxu0 %v1072_v20  ;;  %v1098_v18 = vpack.c.bf16 %v725_v17, %v724_v16  ;;  %v727_v20 = vld [vmem:[%s1321_s1 + $0x38] sm:$0xff]  ;;  %v728_v24 = vld [vmem:[%s1321_s1 + $0x40] sm:$0xff] }
   0xc   :  { %1077 = vmatpush1.bf16.msra.mxu1 %v1076_v25  ;;  %v1101_v23 = vpack.c.bf16 %v727_v20, %v726_v19  ;;  %v729_v25 = vld [vmem:[%s1321_s1 + $0x48] sm:$0xff]  ;;  %v731_v28 = vld [vmem:[%s1321_s1 + $0x58] sm:$0xff] }
   0xd   :  { %987 = vmatmul.mubr.msk.f32.gmra.mrb[2].mxu0 %vm29_vm0, %v12_v26  ;;  %1094 = vmatprep.subr.bf16.mxu1 %v1129_v30 }
   0xe   :  { %989 = vmatmul.mubr.msk.f32.gmra.mrb[2].mxu1 %vm29_vm0, %v12_v26  ;;  %254 = vmatprep.mubr.f32.mxu0 %v1128_v3 }
   0xf   :  { %331 = vmatprep.mubr.f32.mxu1 %v1128_v3 }
  0x11   :  { %990 = vmatmul.mubr.msk.f32.vlgmr.msra.gmra.mrb[4].mxu0 %vm29_vm0, %v11_v12 }
  0x12   :  { %260 = vmatprep.mubr.f32.mxu0 %v1128_v3  ;;  %992 = vmatmul.mubr.msk.f32.vlgmr.msra.gmra.mrb[4].mxu1 %vm29_vm0, %v11_v12  ;;  %v365_v12 = vld [vmem:[%s1320_s0 + $0xa8] sm:$0xf] }
  0x13   :  { %337 = vmatprep.mubr.f32.mxu1 %v1128_v3  ;;  %1096 = vmatpush3.bf16.msra.mxu1 %v1095_v31  ;;  %v808_v31 = vld [vmem:[%s1321_s1 + $0x60] sm:$0xff] }
  0x14   :  { %1097 = vmatprep.subr.bf16.mxu1 %v1129_v30 }
  0x15   :  { %991 = vmatmul.mubr.msk.f32.gmra.mrb[6].mxu0 %vm29_vm0, %v12_v26 }
  0x16   :  { %993 = vmatmul.mubr.msk.f32.gmra.mrb[6].mxu1 %vm29_vm0, %v12_v26  ;;  %432 = vmatprep.mubr.f32.mxu0 %v361_v27  ;;  %v1104_v26 = vpack.c.bf16 %v729_v25, %v728_v24  ;;  %v730_v27 = vld [vmem:[%s1321_s1 + $0x50] sm:$0xff] }
  0x17   :  { %1022 = vmatprep.mubr.msk.f32.mxu1 %vm1130_vm1, %v1128_v3  ;;  %v1107_v29 = vpack.c.bf16 %v731_v28, %v730_v27 }
  0xdc   :  { %v102_v32 = vpop.f32.mrb[0].mxu0 }
  0xdd   :  { %v104_v33 = vpop.f32.mrb[1].mxu0  ;;  %v179_v34 = vpop.f32.mrb[0].mxu1  ;;  %v344_v38 = vmax.f32 %v102_v32, 0.0  ;;  %v809_v32 = vld [vmem:[%s1321_s1 + $0x68] sm:$0xff] }
  0xde   :  { %v181_v35 = vpop.f32.mrb[1].mxu1  ;;  %v346_v37 = vmax.f32 %v179_v34, 0.0  ;;  %v345_v43 = vmax.f32 %v104_v33, 0.0  ;;  %v650_v33 = vld [vmem:[%s1321_s1 + $0x90] sm:$0xf] }
  0xdf   :  { %v347_v41 = vmax.f32 %v181_v35, 0.0  ;;  %v1110_v35 = vpack.c.bf16 %v809_v32, %v808_v31 }
  0xe0   :  { %v108_v36 = vpop.f32.mrb[2].mxu0 }
  0xe1   :  { %v352_v39 = vmax.f32 %v108_v36, 0.0  ;;  %v110_v40 = vpop.f32.mrb[3].mxu0  ;;  %v185_v42 = vpop.f32.mrb[2].mxu1 }
  0xe2   :  { %v353_v44 = vmax.f32 %v110_v40, 0.0  ;;  %v354_v45 = vmax.f32 %v185_v42, 0.0  ;;  %v187_v46 = vpop.f32.mrb[3].mxu1 }
  0xe3   :  { %v1080_v47 = vpack.c.bf16 %v352_v39, %v344_v38  ;;  %v355_v48 = vmax.f32 %v187_v46, 0.0  ;;  %v810_v38 = vld [vmem:[%s1321_s1 + $0x70] sm:$0xff]  ;;  %v811_v39 = vld [vmem:[%s1321_s1 + $0x78] sm:$0xff] }
  0xe4   :  { %v1078_v49 = vpack.c.bf16 %v353_v44, %v345_v43  ;;  %v1084_v50 = vpack.c.bf16 %v354_v45, %v346_v37  ;;  %v256_v51 = vpop.f32.mrb[4].mxu0  ;;  %v1113_v40 = vpack.c.bf16 %v811_v39, %v810_v38  ;;  %v888_v45 = vld [vmem:[%s1321_s1 + $0x88] sm:$0xff] }
  0xe5   :  { %v1082_v52 = vpack.c.bf16 %v355_v48, %v347_v41  ;;  %v258_v53 = vpop.f32.mrb[5].mxu0  ;;  %v333_v54 = vpop.f32.mrb[4].mxu1  ;;  %v348_v56 = vmax.f32 %v256_v51, 0.0  ;;  %v732_v41 = vld [vmem:[%s1321_s1 + $0x98] sm:$0xf] }
  0xe6   :  { %1079 = vmatprep.subr.bf16.mxu0 %v1078_v49  ;;  %v335_v55 = vpop.f32.mrb[5].mxu1  ;;  %v349_v57 = vmax.f32 %v258_v53, 0.0  ;;  %v350_v59 = vmax.f32 %v333_v54, 0.0 }
  0xe7   :  { %1081 = vmatpush1.bf16.xpose.msra.mxu0 %v1080_v47  ;;  %v351_v62 = vmax.f32 %v335_v55, 0.0  ;;  %v812_v47 = vld [vmem:[%s1321_s1 + $0xa0] sm:$0xf] }
  0xe8   :  { %1083 = vmatprep.subr.bf16.mxu0 %v1082_v52  ;;  %v262_v58 = vpop.f32.mrb[6].mxu0 }
  0xe9   :  { %v356_v60 = vmax.f32 %v262_v58, 0.0  ;;  %v264_v61 = vpop.f32.mrb[7].mxu0  ;;  %v339_v63 = vpop.f32.mrb[6].mxu1 }
  0xea   :  { %v357_v0 = vmax.f32 %v264_v61, 0.0  ;;  %v358_v1 = vmax.f32 %v339_v63, 0.0  ;;  %v341_v2 = vpop.f32.mrb[7].mxu1 }
  0xeb   :  { %v1088_v4 = vpack.c.bf16 %v356_v60, %v348_v56  ;;  %v359_v6 = vmax.f32 %v341_v2, 0.0 }
  0xec   :  { %v1086_v7 = vpack.c.bf16 %v357_v0, %v349_v57  ;;  %v1092_v8 = vpack.c.bf16 %v358_v1, %v350_v59 }
  0xed   :  { %v1090_v10 = vpack.c.bf16 %v359_v6, %v351_v62 }
  0xee   :  { %433 = vmatmul.mubr.f32.vlgmr.msra.gmra.mrb[8].mxu0 %v360_v5 }
  0xef   :  { %1085 = vmatpush1.bf16.xpose.msra.mxu0 %v1084_v50  ;;  %502 = vmatprep.mubr.f32.mxu0 %v363_v9 }
  0xf0   :  { %1087 = vmatprep.subr.bf16.mxu0 %v1086_v7 }
  0xf6   :  { %503 = vmatmul.mubr.f32.vlgmr.msra.gmra.mrb[8].mxu0 %v362_v11 }
  0xf7   :  { %1089 = vmatpush1.bf16.xpose.msra.mxu0 %v1088_v4  ;;  %572 = vmatprep.mubr.f32.mxu0 %v365_v12 }
  0xf8   :  { %1091 = vmatprep.subr.bf16.mxu0 %v1090_v10 }
  0xfe   :  { %573 = vmatmul.mubr.f32.vlgmr.msra.gmra.mrb[8].mxu0 %v364_v13 }
  0xff   :  { %1093 = vmatpush1.bf16.xpose.msra.mxu0 %v1092_v8  ;;  %642 = vmatprep.mubr.f32.mxu0 %v367_v14 }
 0x100   :  { %1115 = vmatprep.subr.bf16.mxu0 %v1129_v30 }
 0x106   :  { %643 = vmatmul.mubr.f32.vlgmr.msra.gmra.mrb[8].mxu0 %v366_v15 }
 0x107   :  { %1059 = vmatprep.mubr.msk.f32.mxu0 %vm1130_vm1, %v1128_v3 }
 0x1d9   :  { %v644_v21 = vpop.f32.mrb[8].mxu0 }
 0x1da   :  { %v646_v22 = vpop.f32.mrb[9].mxu0  ;;  %1023 = vmatmul.mubr.msk.f32.vlgmr.msra.gmra.mrb[8].mxu1 %vm29_vm0, %v644_v21 }
 0x1db   :  { %1099 = vmatpush3.bf16.msra.mxu1 %v1098_v18  ;;  %1041 = vmatprep.mubr.msk.f32.mxu1 %vm1130_vm1, %v1128_v3 }
 0x1dc   :  { %1100 = vmatprep.subr.bf16.mxu1 %v1129_v30 }
 0x1df   :  { %1102 = vmatpush3.bf16.msra.mxu1 %v1101_v23 }
 0x1e0   :  { %1103 = vmatprep.subr.bf16.mxu1 %v1129_v30 }
 0x1e3   :  { %1105 = vmatpush3.bf16.msra.mxu1 %v1104_v26 }
 0x1e4   :  { %1106 = vmatprep.subr.bf16.mxu1 %v1129_v30 }
 0x1e7   :  { %1108 = vmatpush3.bf16.msra.mxu1 %v1107_v29 }
 0x1e8   :  { %1109 = vmatprep.subr.bf16.mxu1 %v1129_v30 }
 0x2ad   :  { %v720_v34 = vpop.f32.mrb[8].mxu1 }
 0x2ae   :  { %v721_v36 = vadd.f32 %v720_v34, %v650_v33  ;;  %v1024_v37 = vpop.f32.mrb[9].mxu1 }
 0x2b0   :  { %1042 = vmatmul.mubr.msk.f32.vlgmr.msra.gmra.mrb[10].mxu1 %vm733_vm2, %v721_v36 }
 0x2b1   :  { %1111 = vmatpush3.bf16.msra.mxu1 %v1110_v35  ;;  %1052 = vmatprep.mubr.msk.f32.mxu1 %vm1130_vm1, %v1128_v3 }
 0x2b2   :  { %1112 = vmatprep.subr.bf16.mxu1 %v1129_v30  ;;  %v887_v30 = vld [vmem:[%s1321_s1 + $0x80] sm:$0xff] }
 0x2b3   :  { %v1116_v46 = vpack.c.bf16 %v888_v45, %v887_v30 }
 0x2b5   :  { %1114 = vmatpush3.bf16.msra.mxu1 %v1113_v40  ;;  %1117 = vmatpush3.bf16.msra.mxu0 %v1116_v46 }
 0x383   :  { %v803_v42 = vpop.f32.mrb[10].mxu1 }
 0x384   :  { %v804_v43 = vadd.f32 %v803_v42, %v732_v41  ;;  %v1043_v44 = vpop.f32.mrb[11].mxu1 }
 0x386   :  { %v807_v3 = vmax.f32 %v804_v43, 0.0 }
 0x388   :  { %1053 = vmatmul.mubr.msk.f32.vlgmr.msra.gmra.mrb[12].mxu1 %vm813_vm3, %v807_v3 }
 0x45b   :  { %v883_v48 = vpop.f32.mrb[12].mxu1 }
 0x45c   :  { %v884_v49 = vadd.f32 %v883_v48, %v812_v47  ;;  %v1054_v50 = vpop.f32.mrb[13].mxu1 }
 0x45e   :  { %1060 = vmatmul.mubr.msk.f32.vlgmr.msra.gmra.mrb[10].mxu0 %vm29_vm0, %v884_v49  ;;  %v890_v51 = vrot.slane %v884_v49, 2  ;;  %v978_v60 = vsel %vm29_vm0, %v884_v49, 0.0 }
 0x460   :  { %v892_v52 = vmul.f32 %v890_v51, %v884_v49 }
 0x462   :  { %v894_v53 = vsel %vm893_vm4, %v892_v52, 0.0 }
 0x463   :  { %895 = vadd.xlane.f32.xlu0 %v894_v53 }
 0x4f0   :  { %v896_v56 = vpop.xlane.xlu0 %895 }
 0x531   :  { %v965_v54 = vpop.f32.mrb[10].mxu0 }
 0x532   :  { %970 = vrot.lane.b32.xlu0 %v965_v54, %s1131_s14  ;;  %v1061_v55 = vpop.f32.mrb[11].mxu0 }
 0x5a4   :  { %v971_v57 = vpop.permute.xlu0 %970 }
 0x5a5   :  { %v974_v58 = vsel %vm973_vm5, %v896_v56, %v971_v57 }
 0x5a6   :  { %v975_v59 = vmul.f32 14.285714, %v974_v58 }
 0x5a8   :  { %v977_v61 = vsel %vm976_vm6, %v975_v59, 0.0 }
 0x5a9   :  { %v980_v62 = vsel %vm979_vm7, %v977_v61, %v978_v60 }
 0x5aa   :  { %981 = vst [vmem:[%s1322_s2] sm:$0xf] %v980_v62 }

</bundles_post_ra>
